<compile_context>
chip_gen: v7x
topology: tpu7x:2x2x1
jax: 0.10.0
libtpu: 0.0.40
codegen_flags: <defaults>
</compile_context>

<pallas_src>
import functools

import jax
import jax.numpy as jnp
from jax.experimental import pallas as pl
from jax.experimental.pallas import tpu as pltpu


def _round_up(x, m):
    return (x + m - 1) // m * m


def _pick_hw_tile(hw):
    """Largest row tile (multiple of 8, <=512) dividing HW that yields >=2 tiles."""
    for t in (512, 384, 256, 128, 64, 32, 16, 8):
        if hw % t == 0 and hw // t >= 2:
            return t
    return hw  # single tile; block == full array dim, still legal


# ----------------------------------------------------------------------------
# Fused kernel: per (image, HW row tile): conv3x3(+bias,ReLU) partial-GAP;
# final tile: GAP finalize + Linear head.
# ----------------------------------------------------------------------------
def _fused_forward_kernel(x_ref, wc_ref, bc_ref, wh_ref, bh_ref,
                          feat_ref, out_ref, acc_ref, *, inv_hw):
    """One grid step == one (image, HW-row-tile) pair.

    x_ref   : (1, tile_hw, K_pad) bf16 im2col slab (tap-major, channel-minor)
    wc_ref  : (K_pad, E_pad)      bf16 conv weight
    bc_ref  : (1, E_pad)          f32  conv bias (zero-padded)
    wh_ref  : (E_pad, N_pad)      bf16 head weight (pre-transposed, zero-padded)
    bh_ref  : (1, N_pad)          f32  head bias (zero-padded)
    feat_ref: (1, 1, E_pad)       f32  pooled embedding (encode output)
    out_ref : (1, 1, N_pad)       f32  logits
    acc_ref : (1, E_pad)          f32  running sum of relu(conv) over HW tiles
    """
    t = pl.program_id(1)

    @pl.when(t == 0)
    def _():
        acc_ref[...] = jnp.zeros_like(acc_ref)

    # Whole 3x3 conv for this row tile as ONE MXU matmul (K = 9*Cin, padded).
    conv = jnp.dot(x_ref[0], wc_ref[...], preferred_element_type=jnp.float32)
    act = jnp.maximum(conv + bc_ref[...], 0.0)            # (tile_hw, E_pad)

    # Partial global-average-pool: sublane-axis reduce, accumulate per image.
    acc_ref[...] += jnp.sum(act, axis=0, keepdims=True)

    @pl.when(t == pl.num_programs(1) - 1)
    def _():
        feat = acc_ref[...] * inv_hw                       # (1, E_pad)
        feat_ref[...] = feat.reshape(feat_ref.shape)
        # Head AFTER pooling: one tiny (8, E_pad) x (E_pad, N_pad) MXU pass.
        feat8 = jnp.broadcast_to(feat, (8, feat.shape[-1])).astype(wh_ref.dtype)
        logits = jnp.dot(feat8, wh_ref[...], preferred_element_type=jnp.float32)
        out_ref[...] = (logits[0:1, :] + bh_ref[...]).reshape(out_ref.shape)


# ----------------------------------------------------------------------------
# Wrapper: NCHW -> NHWC, SAME pad, im2col to lane-friendly bf16 slab, one
# pallas_call, final slice of padded tails.
# ----------------------------------------------------------------------------
@jax.jit
def _fused_forward(x_nchw, wc, bc, wh, bh):
    B, Cin, H, W = x_nchw.shape
    HW = H * W
    k_raw = 9 * Cin
    k_pad, e_pad = wc.shape
    n_pad = wh.shape[1]

    # XLA-side glue (cheap at Cin=3): build the im2col slab once so the kernel's
    # contraction dim is dense and Cin never sits on the 128-lane axis.
    x = jnp.transpose(x_nchw, (0, 2, 3, 1)).astype(jnp.float32)   # NCHW -> NHWC
    xp = jnp.pad(x, ((0, 0), (1, 1), (1, 1), (0, 0)))             # SAME padding
    taps = [xp[:, di:di + H, dj:dj + W, :] for di in range(3) for dj in range(3)]
    patches = jnp.concatenate(taps, axis=-1).reshape(B, HW, k_raw)
    patches = jnp.pad(patches, ((0, 0), (0, 0), (0, k_pad - k_raw)))
    patches = patches.astype(jnp.bfloat16)

    tile_hw = _pick_hw_tile(HW)
    num_tiles = HW // tile_hw

    kernel = functools.partial(_fused_forward_kernel, inv_hw=1.0 / HW)

    # VMEM budget sized to the tiles (double-buffered input + weights + acts).
    x_blk_bytes = tile_hw * max(k_pad, 128) * 2
    per_step = (2 * x_blk_bytes + 2 * (k_pad * e_pad + e_pad * n_pad)
                + tile_hw * e_pad * 4 + (e_pad + n_pad) * 16)
    vmem_limit = int(min(max(4 * per_step + (4 << 20), 16 << 20), 48 << 20))

    cost = pl.CostEstimate(
        flops=2 * B * HW * k_pad * e_pad + 2 * B * 8 * e_pad * n_pad,
        transcendentals=0,
        bytes_accessed=(patches.size * 2
                        + (k_pad * e_pad + e_pad * n_pad) * 2
                        + (e_pad + n_pad) * 4
                        + B * (e_pad + n_pad) * 4))

    feats, logits = pl.pallas_call(
        kernel,
        out_shape=(jax.ShapeDtypeStruct((B, 1, e_pad), jnp.float32),
                   jax.ShapeDtypeStruct((B, 1, n_pad), jnp.float32)),
        grid=(B, num_tiles),
        in_specs=[
            pl.BlockSpec((1, tile_hw, k_pad), lambda b, t: (b, t, 0)),
            pl.BlockSpec((k_pad, e_pad), lambda b, t: (0, 0)),
            pl.BlockSpec((1, e_pad), lambda b, t: (0, 0)),
            pl.BlockSpec((e_pad, n_pad), lambda b, t: (0, 0)),
            pl.BlockSpec((1, n_pad), lambda b, t: (0, 0)),
        ],
        out_specs=(
            pl.BlockSpec((1, 1, e_pad), lambda b, t: (b, 0, 0)),
            pl.BlockSpec((1, 1, n_pad), lambda b, t: (b, 0, 0)),
        ),
        scratch_shapes=[pltpu.VMEM((1, e_pad), jnp.float32)],
        compiler_params=pltpu.CompilerParams(
            dimension_semantics=("parallel", "arbitrary"),
            vmem_limit_bytes=vmem_limit),
        cost_estimate=cost,
    )(patches, wc, bc, wh, bh)

    return feats.reshape(B, e_pad), logits.reshape(B, n_pad)


# ----------------------------------------------------------------------------
# Pure-JAX reference (f32) for correctness checking.
# ----------------------------------------------------------------------------
def _reference_forward(x_nchw, conv_w, conv_b, head_w, head_b):
    B, Cin, H, W = x_nchw.shape
    x = jnp.transpose(x_nchw, (0, 2, 3, 1)).astype(jnp.float32)
    xp = jnp.pad(x, ((0, 0), (1, 1), (1, 1), (0, 0)))
    taps = [xp[:, di:di + H, dj:dj + W, :] for di in range(3) for dj in range(3)]
    patches = jnp.concatenate(taps, axis=-1).reshape(B, H * W, 9 * Cin)
    wc = jnp.transpose(conv_w, (2, 3, 1, 0)).reshape(9 * Cin, -1)
    act = jnp.maximum(patches @ wc + conv_b, 0.0)
    feat = jnp.mean(act, axis=1)
    logits = feat @ head_w.T + head_b
    return feat, logits


# ----------------------------------------------------------------------------
# Model
# ----------------------------------------------------------------------------
class VisualModelTimmPallas:
    """Synthetic stand-in for VisualModelTimm: conv-stem encoder + Linear head."""

    def __init__(self, in_chans=3, embedding_size=32, num_classes=10, key=None):
        key = jax.random.PRNGKey(0) if key is None else key
        k1, k2, k3, k4 = jax.random.split(key, 4)
        self.in_chans = in_chans
        self.embedding_size = embedding_size
        self.num_classes = num_classes

        # Parameters in PyTorch layouts (f32 "master" copies).
        conv_w = jax.random.normal(
            k1, (embedding_size, in_chans, 3, 3), jnp.float32) * 0.05
        conv_b = jax.random.normal(k2, (embedding_size,), jnp.float32) * 0.01
        head_w = jax.random.normal(
            k3, (num_classes, embedding_size), jnp.float32) * 0.05
        head_b = jax.random.normal(k4, (num_classes,), jnp.float32) * 0.01
        self.conv_w, self.conv_b = conv_w, conv_b
        self.head_w, self.head_b = head_w, head_b

        # Pre-packed, padded, bf16 kernel operands (hoisted out of forward()).
        k_raw = 9 * in_chans
        k_pad = _round_up(k_raw, 16)                     # bf16-friendly K
        e_pad = _round_up(embedding_size, 128)
        n_pad = _round_up(num_classes, 128)
        self.k_pad, self.e_pad, self.n_pad = k_pad, e_pad, n_pad

        # conv weight (E, Cin, 3, 3) -> (kh, kw, Cin, E) -> (9*Cin, E) -> padded bf16.
        wc = jnp.transpose(conv_w, (2, 3, 1, 0)).reshape(k_raw, embedding_size)
        self._wc = jnp.pad(wc, ((0, k_pad - k_raw),
                                (0, e_pad - embedding_size))).astype(jnp.bfloat16)
        self._bc = jnp.pad(conv_b, (0, e_pad - embedding_size)).reshape(1, e_pad)
        # head weight (N, E) -> (E_pad, N_pad) bf16; bias -> (1, N_pad) f32.
        self._wh = jnp.pad(head_w.T, ((0, e_pad - embedding_size),
                                      (0, n_pad - num_classes))).astype(jnp.bfloat16)
        self._bh = jnp.pad(head_b, (0, n_pad - num_classes)).reshape(1, n_pad)

    def _forward(self, x_nchw):
        assert x_nchw.shape[1] == self.in_chans
        feats, logits = _fused_forward(x_nchw, self._wc, self._bc,
                                       self._wh, self._bh)
        return (feats[:, :self.embedding_size],
                logits[:, :self.num_classes])

    def encode(self, x_nchw):
        return self._forward(x_nchw)[0]

    def __call__(self, x_nchw):
        return self._forward(x_nchw)[1]


# ----------------------------------------------------------------------------
if __name__ == "__main__":
    key = jax.random.PRNGKey(0)
    k_model, k_x = jax.random.split(key)

    B, C, H, W = 2, 3, 16, 16          # NCHW like the PyTorch module
    num_classes = 10
    embedding_size = 32

    model = VisualModelTimmPallas(in_chans=C, embedding_size=embedding_size,
                                  num_classes=num_classes, key=k_model)
    x = jax.random.normal(k_x, (B, C, H, W), jnp.float32)

    logits = model(x)
    jax.block_until_ready(logits)
    assert logits.shape == (B, num_classes)

    feats = model.encode(x)
    jax.block_until_ready(feats)
    assert feats.shape == (B, embedding_size)

    # Correctness vs. pure-JAX f32 reference (loose tol for bf16 matmul operands).
    ref_feats, ref_logits = _reference_forward(x, model.conv_w, model.conv_b,
                                               model.head_w, model.head_b)
    assert jnp.max(jnp.abs(feats - ref_feats)) < 5e-2
    assert jnp.max(jnp.abs(logits - ref_logits)) < 5e-2

    print("KERNEL_OK")
</pallas_src>

<mosaic_0001>
module attributes {stable_mosaic.version = 11 : i64} {
  func.func @_fused_forward_kernel(%arg0: i32, %arg1: i32, %arg2: memref<1x128x32xbf16, #tpu.memory_space<vmem>>, %arg3: memref<32x128xbf16, #tpu.memory_space<vmem>>, %arg4: memref<1x128xf32, #tpu.memory_space<vmem>>, %arg5: memref<128x128xbf16, #tpu.memory_space<vmem>>, %arg6: memref<1x128xf32, #tpu.memory_space<vmem>>, %arg7: memref<1x1x128xf32, #tpu.memory_space<vmem>>, %arg8: memref<1x1x128xf32, #tpu.memory_space<vmem>>, %arg9: memref<1x128xf32, #tpu.memory_space<vmem>>) attributes {dimension_semantics = [#tpu.dimension_semantics<parallel>, #tpu.dimension_semantics<arbitrary>], iteration_bounds = array<i64: 2, 2>, scalar_prefetch = 0 : i64, scratch_operands = 1 : i64, tpu.core_type = #tpu.core_type<tc>, window_params = [{transform_indices = @transform_0, window_bounds = array<i64: 1, 128, 32>}, {pipeline_mode = #tpu.pipeline_mode<synchronous>, transform_indices = @transform_1, window_bounds = array<i64: 32, 128>}, {pipeline_mode = #tpu.pipeline_mode<synchronous>, transform_indices = @transform_2, window_bounds = array<i64: 1, 128>}, {pipeline_mode = #tpu.pipeline_mode<synchronous>, transform_indices = @transform_3, window_bounds = array<i64: 128, 128>}, {pipeline_mode = #tpu.pipeline_mode<synchronous>, transform_indices = @transform_4, window_bounds = array<i64: 1, 128>}, {transform_indices = @transform_5, window_bounds = array<i64: 1, 1, 128>}, {transform_indices = @transform_6, window_bounds = array<i64: 1, 1, 128>}]} {
    %c0_i32 = arith.constant 0 : i32
    %0 = arith.cmpi eq, %arg1, %c0_i32 : i32
    %1 = arith.extui %0 : i1 to i32
    %c0_i32_0 = arith.constant 0 : i32
    %2 = arith.cmpi ne, %1, %c0_i32_0 : i32
    scf.if %2 {
      %cst_14 = arith.constant 0.000000e+00 : f32
      %20 = vector.broadcast %cst_14 : f32 to vector<1x128xf32>
      %c0_15 = arith.constant 0 : index
      %c0_16 = arith.constant 0 : index
      %21 = vector.load %arg9[%c0_15, %c0_16] : memref<1x128xf32, #tpu.memory_space<vmem>>, vector<1x128xf32>
      tpu.vector_store %arg9[%c0_15, %c0_16], %20 {strides = array<i32>} : memref<1x128xf32, #tpu.memory_space<vmem>>, vector<1x128xf32>,
    } else {
    }
    %c0 = arith.constant 0 : index
    %c0_1 = arith.constant 0 : index
    %c0_2 = arith.constant 0 : index
    %3 = vector.load %arg2[%c0, %c0_1, %c0_2] : memref<1x128x32xbf16, #tpu.memory_space<vmem>>, vector<1x128x32xbf16>
    %4 = vector.shape_cast %3 : vector<1x128x32xbf16> to vector<128x32xbf16>
    %c0_3 = arith.constant 0 : index
    %c0_4 = arith.constant 0 : index
    %5 = vector.load %arg3[%c0_3, %c0_4] : memref<32x128xbf16, #tpu.memory_space<vmem>>, vector<32x128xbf16>
    %cst = arith.constant dense<0.000000e+00> : vector<128x128xf32>
    %6 = tpu.matmul %4, %5, %cst {dimension_numbers = #tpu.dot_dimension_numbers<[1], [0], [0], [1], [0, 0, 1, 1], [], []>} : vector<128x32xbf16>, vector<32x128xbf16>, vector<128x128xf32> -> vector<128x128xf32>
    %c0_5 = arith.constant 0 : index
    %c0_6 = arith.constant 0 : index
    %7 = vector.load %arg4[%c0_5, %c0_6] : memref<1x128xf32, #tpu.memory_space<vmem>>, vector<1x128xf32>
    %8 = vector.broadcast %7 : vector<1x128xf32> to vector<128x128xf32>
    %9 = arith.addf %6, %8 : vector<128x128xf32>
    %cst_7 = arith.constant 0.000000e+00 : f32
    %10 = vector.broadcast %cst_7 : f32 to vector<128x128xf32>
    %11 = arith.maximumf %9, %10 : vector<128x128xf32>
    %c0_8 = arith.constant 0 : index
    %c0_9 = arith.constant 0 : index
    %12 = vector.load %arg9[%c0_8, %c0_9] : memref<1x128xf32, #tpu.memory_space<vmem>>, vector<1x128xf32>
    %cst_10 = arith.constant dense<0.000000e+00> : vector<128xf32>
    %13 = vector.multi_reduction <add>, %11, %cst_10 [0] : vector<128x128xf32> to vector<128xf32>
    %14 = vector.shape_cast %13 : vector<128xf32> to vector<1x128xf32>
    %15 = arith.addf %12, %14 : vector<1x128xf32>
    %c0_11 = arith.constant 0 : index
    %c0_12 = arith.constant 0 : index
    %16 = vector.load %arg9[%c0_11, %c0_12] : memref<1x128xf32, #tpu.memory_space<vmem>>, vector<1x128xf32>
    tpu.vector_store %arg9[%c0_11, %c0_12], %15 {strides = array<i32>} : memref<1x128xf32, #tpu.memory_space<vmem>>, vector<1x128xf32>,
    %c1_i32 = arith.constant 1 : i32
    %17 = arith.cmpi eq, %arg1, %c1_i32 : i32
    %18 = arith.extui %17 : i1 to i32
    %c0_i32_13 = arith.constant 0 : i32
    %19 = arith.cmpi ne, %18, %c0_i32_13 : i32
    scf.if %19 {
      %c0_14 = arith.constant 0 : index
      %c0_15 = arith.constant 0 : index
      %20 = vector.load %arg9[%c0_14, %c0_15] : memref<1x128xf32, #tpu.memory_space<vmem>>, vector<1x128xf32>
      %cst_16 = arith.constant 3.906250e-03 : f32
      %21 = vector.broadcast %cst_16 : f32 to vector<1x128xf32>
      %22 = arith.mulf %20, %21 : vector<1x128xf32>
      %23 = vector.shape_cast %22 : vector<1x128xf32> to vector<1x1x128xf32>
      %c0_17 = arith.constant 0 : index
      %c0_18 = arith.constant 0 : index
      %c0_19 = arith.constant 0 : index
      %24 = vector.load %arg7[%c0_17, %c0_18, %c0_19] : memref<1x1x128xf32, #tpu.memory_space<vmem>>, vector<1x1x128xf32>
      tpu.vector_store %arg7[%c0_17, %c0_18, %c0_19], %23 {strides = array<i32>} : memref<1x1x128xf32, #tpu.memory_space<vmem>>, vector<1x1x128xf32>,
      %25 = vector.shape_cast %22 : vector<1x128xf32> to vector<1x128xf32>
      %26 = vector.broadcast %25 : vector<1x128xf32> to vector<8x128xf32>
      %27 = arith.truncf %26 : vector<8x128xf32> to vector<8x128xbf16>
      %c0_20 = arith.constant 0 : index
      %c0_21 = arith.constant 0 : index
      %28 = vector.load %arg5[%c0_20, %c0_21] : memref<128x128xbf16, #tpu.memory_space<vmem>>, vector<128x128xbf16>
      %cst_22 = arith.constant dense<0.000000e+00> : vector<8x128xf32>
      %29 = tpu.matmul %27, %28, %cst_22 {dimension_numbers = #tpu.dot_dimension_numbers<[1], [0], [0], [1], [0, 0, 1, 1], [], []>} : vector<8x128xbf16>, vector<128x128xbf16>, vector<8x128xf32> -> vector<8x128xf32>
      %30 = vector.extract_strided_slice %29 {offsets = [0, 0], sizes = [1, 128], strides = [1, 1]} : vector<8x128xf32> to vector<1x128xf32>
      %c0_23 = arith.constant 0 : index
      %c0_24 = arith.constant 0 : index
      %31 = vector.load %arg6[%c0_23, %c0_24] : memref<1x128xf32, #tpu.memory_space<vmem>>, vector<1x128xf32>
      %32 = arith.addf %30, %31 : vector<1x128xf32>
      %33 = vector.shape_cast %32 : vector<1x128xf32> to vector<1x1x128xf32>
      %c0_25 = arith.constant 0 : index
      %c0_26 = arith.constant 0 : index
      %c0_27 = arith.constant 0 : index
      %34 = vector.load %arg8[%c0_25, %c0_26, %c0_27] : memref<1x1x128xf32, #tpu.memory_space<vmem>>, vector<1x1x128xf32>
      tpu.vector_store %arg8[%c0_25, %c0_26, %c0_27], %33 {strides = array<i32>} : memref<1x1x128xf32, #tpu.memory_space<vmem>>, vector<1x1x128xf32>,
    } else {
    }
    return
  }
  func.func @transform_0(%arg0: i32, %arg1: i32) -> (i32, i32, i32) {
    %c0_i32 = arith.constant 0 : i32
    %c0_i32_0 = arith.constant 0 : i32
    return %arg0, %arg1, %c0_i32 : i32, i32, i32
  }
  func.func @transform_1(%arg0: i32, %arg1: i32) -> (i32, i32) {
    %c0_i32 = arith.constant 0 : i32
    %c0_i32_0 = arith.constant 0 : i32
    %c0_i32_1 = arith.constant 0 : i32
    return %c0_i32, %c0_i32_0 : i32, i32
  }
  func.func @transform_2(%arg0: i32, %arg1: i32) -> (i32, i32) {
    %c0_i32 = arith.constant 0 : i32
    %c0_i32_0 = arith.constant 0 : i32
    %c0_i32_1 = arith.constant 0 : i32
    return %c0_i32, %c0_i32_0 : i32, i32
  }
  func.func @transform_3(%arg0: i32, %arg1: i32) -> (i32, i32) {
    %c0_i32 = arith.constant 0 : i32
    %c0_i32_0 = arith.constant 0 : i32
    %c0_i32_1 = arith.constant 0 : i32
    return %c0_i32, %c0_i32_0 : i32, i32
  }
  func.func @transform_4(%arg0: i32, %arg1: i32) -> (i32, i32) {
    %c0_i32 = arith.constant 0 : i32
    %c0_i32_0 = arith.constant 0 : i32
    %c0_i32_1 = arith.constant 0 : i32
    return %c0_i32, %c0_i32_0 : i32, i32
  }
  func.func @transform_5(%arg0: i32, %arg1: i32) -> (i32, i32, i32) {
    %c0_i32 = arith.constant 0 : i32
    %c0_i32_0 = arith.constant 0 : i32
    %c0_i32_1 = arith.constant 0 : i32
    return %arg0, %c0_i32, %c0_i32_0 : i32, i32, i32
  }
  func.func @transform_6(%arg0: i32, %arg1: i32) -> (i32, i32, i32) {
    %c0_i32 = arith.constant 0 : i32
    %c0_i32_0 = arith.constant 0 : i32
    %c0_i32_1 = arith.constant 0 : i32
    return %arg0, %c0_i32, %c0_i32_0 : i32, i32, i32
  }
}

</mosaic_0001>

<bundles_post_ra>
// kernel: _fused_forward.1
= control target key start
LH: loop header
LB: loop body
LE: loop exit
PB: predicated region body
PF: predicated region fallthrough
CT: control target
= control target key end

     0   :  { %s1377_s0 = inlined_call_operand.vmem [shape: bf16[2,256,32], index: 0, kind: input, shape index: {}]   ;;  %s1378_s1 = inlined_call_operand.vmem [shape: bf16[32,128], index: 1, kind: input, shape index: {}]   ;;  %s1379_s2 = inlined_call_operand.vmem [shape: f32[1,128], index: 2, kind: input, shape index: {}]   ;;  %s1380_s3 = inlined_call_operand.vmem [shape: bf16[128,128], index: 3, kind: input, shape index: {}]   ;;  %s1381_s4 = inlined_call_operand.vmem [shape: f32[1,128], index: 4, kind: input, shape index: {}]   ;;  %s1382_s5 = inlined_call_operand.hbm [shape: f32[2,1,128], index: 5, kind: output, shape index: {0}]   ;;  %s1383_s6 = inlined_call_operand.hbm [shape: f32[2,1,128], index: 6, kind: output, shape index: {1}]  }
   0x1   :  { %1385 = sst [smem:[#allocation11_spill]] %s1377_s0 }
   0x2   :  { %12 = vsyncpa [#allocation4], 0 }
   0x3   :  { %14 = vsyncpa [#allocation4 + $0x1], 0 }
   0x4   :  { %15 = vsyncpa [#allocation6], 0 }
   0x5   :  { %17 = vsyncpa [#allocation6 + $0x1], 0  ;;  %s1154_s21 = smov 0   ;;  %s1156_s22 = smov 0  }
   0x6   :  { %s1158_s23 = smov 0   ;;  %s1160_s24 = smov 0  }
   0x7   :  { %s1162_s25 = smov 0   ;;  %s1164_s26 = smov 0  }
   0x8   :  { %s1166_s27 = smov 0   ;;  %s1168_s28 = smov 0  }
   0x9 LB: > { %s785_s29 = sadd.s32 4294967295, %s1112_s28   ;;  %s786_s30 = sadd.s32 4294967294, %s1112_s28   ;;  %s1112_s28 = sphi %s1168_s28, %s23_s28   ;;  %s1108_s27 = sphi %s1166_s27, %s1399_s27   ;;  %s1104_s26 = sphi %s1164_s26, %s1398_s26   ;;  %s1100_s25 = sphi %s1162_s25, %s1397_s25   ;;  %s1096_s24 = sphi %s1160_s24, %s1396_s24   ;;  %s1092_s23 = sphi %s1158_s23, %s1395_s23   ;;  %s1088_s22 = sphi %s1156_s22, %s1394_s22   ;;  %s1084_s21 = sphi %s1154_s21, %s1393_s21  }
   0xa   : > { %s32_s7 = sadd.s32 1, %s1104_s26  ;;  %s35_s8 = sadd.s32 1, %s1108_s27 }
   0xb   : > { %p33_p0 = scmp.ge.s32.totalorder %s32_s7, 2  ;;  %p164_p1 = scmp.ne.s32.totalorder %s1092_s23, %s1088_s22 }
   0xc   : > { %p165_p2 = scmp.eq.s32.totalorder %s785_s29, 3  ;;  %p170_p4 = scmp.ne.s32.totalorder %s1088_s22, %s1084_s21 }
   0xd   : > { %s1401_s7 = smov (%p33_p0, %s32_s7), 0  ;;  %s1403_s8 = smov (!%p33_p0, %s35_s8), %s1108_s27 }
   0xe   : > { %1386 = sst [smem:[#allocation9_spill]] %s1401_s7  ;;  %p1203_p3 = por %p165_p2, %p164_p1 }
   0xf   : > { %p37_p5 = scmp.ge.s32.totalorder %s1403_s8, 2  ;;  %p171_p6 = scmp.eq.s32.totalorder %s786_s30, 3 }
  0x10   : > { %p789_p7 = scmp.ge.s32.totalorder %s1112_s28, 1  ;;  %p240_p8 = scmp.lt.s32.totalorder %s1112_s28, 5 }
  0x11   : > { %s1405_s8 = smov (%p37_p5, %s1403_s8), 0  ;;  %p1213_p9 = por %p171_p6, %p170_p4 }
  0x12   : > { %1388 = sst [smem:[#allocation10_spill]] %s1405_s8  ;;  %p241_p10 = pnand %p789_p7, %p240_p8 }
  0x13   : > { %s151_s11 = ssub.s32 %s1108_s27, %s1405_s8  ;;  %s154_s12 = sadd.s32 1, %s1092_s23 }
  0x14   : > { %p152_p11 = scmp.eq.s32.totalorder %s151_s11, 0  ;;  %244 = sbr.rel (%p241_p10) target bundleno = 584 (0x248), region = 40 }
  0x15   : > { %s1224_s14 = sand.u32 (!%p241_p10), 1, %s1088_s22   ;;  %s790_s15 = sshll.u32 (!%p241_p10), %s1096_s24, 4 }
  0x16   : > { %s1221_s13 = scalar_select %p152_p11, %s1092_s23, %s154_s12  }
  0x17   : > { %p278_p12 = scmp.lt.s32.totalorder (!%p241_p10), %s1100_s25, 1  ;;  %p280_p13 = scmp.lt.s32.totalorder (!%p241_p10), %s790_s15, 31 }
  0x18   : > { %s1390_s0 = sld [smem:[#allocation11_spill]] (!%p241_p10)  ;;  %s270_s11 = scalar_lea.vmem (!%p241_p10), [#allocation3], %s1224_s14 }
  0x19   : > { %s276_s12 = scalar_lea.vmem (!%p241_p10), [#allocation5], %s1224_s14  ;;  %p793_p0 = scmp.ne.s32.totalorder (!%p241_p10), %s1096_s24, 0 }
  0x1b   : > { %s279_s16 = scalar_select %p278_p12, %s1100_s25, 1 }
  0x1c   : > { %s1407_s15 = smov (!%p280_p13, %s790_s15), 31  ;;  %291 = sbr.rel (%p793_p0) target bundleno = 35 (0x23), region = 44 }
  0x1d   : > { %s791_s17 = sshll.u32 %s279_s16, 5  ;;  %v1114_v0 = vmov (!%p793_p0), 0.0  }
  0x1e   : > { %s283_s18 = sadd.s32 %s791_s17, %s1407_s15  ;;  %292 = vst [vmem:[#allocation2] sm:$0x1] (!%p793_p0), %v1114_v0 }
  0x1f   : > { %s792_s19 = sshll.u32 %s283_s18, 2 }
  0x20   : > { %s1232_s30 = scalar_lea.vmem %s1390_s0, %s792_s19 }
  0x23 PF: > { %v968_v1 = vld [vmem:[%s1378_s1] sm:$0xff]   ;;  %v969_v2 = vld [vmem:[%s1378_s1 + $0x8] sm:$0xff]   ;;  %vm372_vm0 = vcmask 261120   ;;  %v972_v5 = vld [vmem:[%s1232_s30 + $0x10] sm:$0xff]   ;;  %p813_p1 = scmp.ne.s32.totalorder %s1096_s24, 1 }
  0x24   : > { %845 = vmatprep.subr.bf16.mxu0 %v968_v1  ;;  %v970_v3 = vld [vmem:[%s1232_s30] sm:$0xff]   ;;  %885 = vmatprep.subr.bf16.mxu1 %v968_v1  ;;  %v971_v4 = vld [vmem:[%s1232_s30 + $0x8] sm:$0xff]   ;;  %v976_v8 = vld [vmem:[%s1232_s30 + $0x30] sm:$0xff]   ;;  %vm1116_vm1 = vmmov (!%p813_p1), 0  }
  0x25   : > { %846 = vmatpush3.bf16.msra.mxu0 %v968_v1  ;;  %887 = vmatpush3.bf16.msra.mxu1 %v968_v1  ;;  %v974_v6 = vld [vmem:[%s1232_s30 + $0x20] sm:$0xff]   ;;  %v975_v7 = vld [vmem:[%s1232_s30 + $0x28] sm:$0xff]   ;;  %v973_v9 = vld [vmem:[%s1232_s30 + $0x18] sm:$0xff]  }
  0x26   : > { %847 = vmatprep.subr.bf16.mxu0 %v969_v2  ;;  %849 = vmatprep.mubr.msk.bf16.mxu0 %vm372_vm0, %v970_v3  ;;  %v977_v10 = vld [vmem:[%s1232_s30 + $0x38] sm:$0xff]   ;;  %v794_v11 = vld [vmem:[%s1379_s2] ss:$0 sm:$0xff] }
  0x27   : > { %886 = vmatprep.subr.bf16.mxu1 %v969_v2  ;;  %857 = vmatprep.mubr.msk.bf16.mxu1 %vm372_vm0, %v974_v6 }
  0x29   : > { %848 = vmatpush3.bf16.msra.mxu0 %v969_v2  ;;  %888 = vmatpush3.bf16.msra.mxu1 %v969_v2 }
  0x2c   : > { %850 = vmatmul.mubr.msk.bf16.vlgmr.msra.gmra.mrb[0].mxu0 %vm372_vm0, %v971_v4  ;;  %858 = vmatmul.mubr.msk.bf16.vlgmr.msra.gmra.mrb[0].mxu1 %vm372_vm0, %v975_v7 }
  0x2d   : > { %853 = vmatprep.mubr.msk.bf16.mxu0 %vm372_vm0, %v972_v5  ;;  %861 = vmatprep.mubr.msk.bf16.mxu1 %vm372_vm0, %v976_v8 }
  0x34   : > { %854 = vmatmul.mubr.msk.bf16.gmra.mrb[4].mxu0 %vm372_vm0, %v973_v9  ;;  %862 = vmatmul.mubr.msk.bf16.gmra.mrb[4].mxu1 %vm372_vm0, %v977_v10 }
  0xff   : > { %v851_v12 = vpop.f32.mrb[0].mxu0  ;;  %v859_v13 = vpop.f32.mrb[0].mxu1 }
 0x100   : > { %v431_v14 = vpop.f32.mrb[1].mxu0  ;;  %v463_v15 = vpop.f32.mrb[1].mxu1  ;;  %v440_v21 = vadd.f32 %v851_v12, %v794_v11  ;;  %v472_v53 = vadd.f32 %v859_v13, %v794_v11 }
 0x101   : > { %v432_v16 = vadd.f32 %v794_v11, %v431_v14  ;;  %v852_v17 = vpop.f32.mrb[2].mxu0  ;;  %v860_v18 = vpop.f32.mrb[2].mxu1  ;;  %v464_v46 = vadd.f32 %v794_v11, %v463_v15 }
 0x102   : > { %v434_v19 = vpop.f32.mrb[3].mxu0  ;;  %v466_v20 = vpop.f32.mrb[3].mxu1  ;;  %v443_v24 = vadd.f32 %v852_v17, %v794_v11  ;;  %v496_v26 = vmax.f32 %v440_v21, 0.0  ;;  %v475_v56 = vadd.f32 %v860_v18, %v794_v11  ;;  %v504_v59 = vmax.f32 %v472_v53, 0.0  ;;  %v510_v17 = vld [vmem:[#allocation2] sm:$0x1] }
 0x103   : > { %v435_v22 = vadd.f32 %v794_v11, %v434_v19  ;;  %v494_v23 = vmax.f32 %v432_v16, 0.0  ;;  %v502_v51 = vmax.f32 %v464_v46, 0.0  ;;  %v467_v52 = vadd.f32 %v794_v11, %v466_v20  ;;  %v979_v21 = vld [vmem:[%s1380_s3 + $0x8] sm:$0xff] (!%p813_p1)  }
 0x104   : > { %v497_v32 = vmax.f32 %v443_v24, 0.0  ;;  %v505_v61 = vmax.f32 %v475_v56, 0.0  ;;  %v1115_v20 = vmov (!%p813_p1), 0.0  }
 0x105   : > { %v495_v25 = vmax.f32 %v435_v22, 0.0  ;;  %v503_v57 = vmax.f32 %v467_v52, 0.0  ;;  %865 = vmatprep.subr.bf16.mxu0 (!%p813_p1), %v1115_v20  ;;  %881 = vmatprep.mubr.msk.bf16.mxu0 (!%p813_p1), %vm1116_vm1, %v1115_v20  ;;  %v980_v22 = vld [vmem:[%s1380_s3 + $0x10] sm:$0xff] (!%p813_p1)  }
 0x107   : > { %v511_v27 = vadd.f32 %v495_v25, %v494_v23  ;;  %v855_v28 = vpop.f32.mrb[4].mxu0  ;;  %v863_v29 = vpop.f32.mrb[4].mxu1  ;;  %v981_v25 = vld [vmem:[%s1380_s3 + $0x18] sm:$0xff] (!%p813_p1)  }
 0x108   : > { %v447_v30 = vpop.f32.mrb[5].mxu0  ;;  %v479_v31 = vpop.f32.mrb[5].mxu1  ;;  %v456_v39 = vadd.f32 %v855_v28, %v794_v11  ;;  %v488_v1 = vadd.f32 %v863_v29, %v794_v11  ;;  %v983_v29 = vld [vmem:[%s1380_s3 + $0x28] sm:$0xff] (!%p813_p1)  }
 0x109   : > { %v512_v33 = vadd.f32 %v511_v27, %v496_v26  ;;  %v448_v34 = vadd.f32 %v794_v11, %v447_v30  ;;  %v856_v35 = vpop.f32.mrb[6].mxu0  ;;  %v864_v36 = vpop.f32.mrb[6].mxu1  ;;  %v480_v58 = vadd.f32 %v794_v11, %v479_v31  ;;  %v542_v26 = vlaneseq (!%p813_p1)  ;;  %v982_v27 = vld [vmem:[%s1380_s3 + $0x20] sm:$0xff] (!%p813_p1)   ;;  %v984_v31 = vld [vmem:[%s1380_s3 + $0x30] sm:$0xff] (!%p813_p1)  }
 0x10a   : > { %v450_v37 = vpop.f32.mrb[7].mxu0  ;;  %v482_v38 = vpop.f32.mrb[7].mxu1  ;;  %v459_v44 = vadd.f32 %v856_v35, %v794_v11  ;;  %v500_v47 = vmax.f32 %v456_v39, 0.0  ;;  %v491_v4 = vadd.f32 %v864_v36, %v794_v11  ;;  %v508_v6 = vmax.f32 %v488_v1, 0.0  ;;  %v652_v35 = vld [vmem:[%s1381_s4] sm:$0x1] (!%p813_p1) }
 0x10b   : > { %v498_v40 = vmax.f32 %v448_v34, 0.0  ;;  %v513_v41 = vadd.f32 %v512_v33, %v497_v32  ;;  %v451_v42 = vadd.f32 %v794_v11, %v450_v37  ;;  %v506_v63 = vmax.f32 %v480_v58, 0.0  ;;  %v985_v33 = vld [vmem:[%s1380_s3 + $0x38] sm:$0xff] (!%p813_p1)  }
 0x10c   : > { %v501_v49 = vmax.f32 %v459_v44, 0.0  ;;  %v483_v0 = vadd.f32 %v794_v11, %v482_v38  ;;  %v509_v8 = vmax.f32 %v491_v4, 0.0  ;;  %v978_v11 = vld [vmem:[%s1380_s3] sm:$0xff] (!%p813_p1)   ;;  %v543_v28 = vshrl.u32 (!%p813_p1), %v542_v26, 7 }
 0x10d   : > { %v514_v43 = vadd.f32 %v513_v41, %v498_v40  ;;  %v499_v45 = vmax.f32 %v451_v42, 0.0  ;;  %866 = vmatpush3.bf16.msra.mxu0 (!%p813_p1), %v978_v11 }
 0x10e   : > { %v507_v5 = vmax.f32 %v483_v0, 0.0  ;;  %867 = vmatprep.subr.bf16.mxu0 (!%p813_p1), %v1115_v20  ;;  %v544_v30 = vsub.s32 (!%p813_p1), 0, %v543_v28 }
 0x10f   : > { %v515_v48 = vadd.f32 %v514_v43, %v499_v45 }
 0x111   : > { %v516_v50 = vadd.f32 %v515_v48, %v500_v47  ;;  %868 = vmatpush3.bf16.msra.mxu0 (!%p813_p1), %v979_v21 }
 0x112   : > { %869 = vmatprep.subr.bf16.mxu0 (!%p813_p1), %v1115_v20 }
 0x113   : > { %v517_v54 = vadd.f32 %v516_v50, %v501_v49 }
 0x115   : > { %v518_v55 = vadd.f32 %v517_v54, %v502_v51  ;;  %870 = vmatpush3.bf16.msra.mxu0 (!%p813_p1), %v980_v22 }
 0x116   : > { %871 = vmatprep.subr.bf16.mxu0 (!%p813_p1), %v1115_v20 }
 0x117   : > { %v519_v60 = vadd.f32 %v518_v55, %v503_v57 }
 0x119   : > { %v520_v62 = vadd.f32 %v519_v60, %v504_v59  ;;  %872 = vmatpush3.bf16.msra.mxu0 (!%p813_p1), %v981_v25 }
 0x11a   : > { %873 = vmatprep.subr.bf16.mxu0 (!%p813_p1), %v1115_v20 }
 0x11b   : > { %v521_v2 = vadd.f32 %v520_v62, %v505_v61 }
 0x11d   : > { %v522_v3 = vadd.f32 %v521_v2, %v506_v63  ;;  %874 = vmatpush3.bf16.msra.mxu0 (!%p813_p1), %v982_v27 }
 0x11e   : > { %875 = vmatprep.subr.bf16.mxu0 (!%p813_p1), %v1115_v20 }
 0x11f   : > { %v523_v7 = vadd.f32 %v522_v3, %v507_v5 }
 0x121   : > { %v524_v9 = vadd.f32 %v523_v7, %v508_v6  ;;  %876 = vmatpush3.bf16.msra.mxu0 (!%p813_p1), %v983_v29 }
 0x122   : > { %877 = vmatprep.subr.bf16.mxu0 (!%p813_p1), %v1115_v20 }
 0x123   : > { %v525_v10 = vadd.f32 %v524_v9, %v509_v8 }
 0x125   : > { %v526_v12 = vrot.slane %v525_v10, 4  ;;  %878 = vmatpush3.bf16.msra.mxu0 (!%p813_p1), %v984_v31 }
 0x126   : > { %879 = vmatprep.subr.bf16.mxu0 (!%p813_p1), %v1115_v20 }
 0x127   : > { %v527_v13 = vadd.f32 %v526_v12, %v525_v10 }
 0x129   : > { %v528_v14 = vrot.slane %v527_v13, 2  ;;  %880 = vmatpush3.bf16.msra.mxu0 (!%p813_p1), %v985_v33 }
 0x12b   : > { %v529_v15 = vadd.f32 %v528_v14, %v527_v13 }
 0x12d   : > { %v530_v16 = vrot.slane %v529_v15, 1  ;;  %537 = sbr.rel (%p813_p1) target bundleno = 536 (0x218), region = 48 }
 0x12f   : > { %v531_v18 = vadd.f32 %v530_v16, %v529_v15 }
 0x131   : > { %v532_v19 = vadd.f32 %v531_v18, %v510_v17 }
 0x133   : > { %533 = vst [vmem:[#allocation2] sm:$0x1] %v532_v19 }
 0x13a   : > { %v538_v23 = vld [vmem:[#allocation2] sm:$0x1] }
 0x13b   : > { %v539_v24 = vmul.f32 0.00390625, %v538_v23 }
 0x13d   : > { %540 = vst [vmem:[%s270_s11] sm:$0x1] %v539_v24  ;;  %v545_v32 = vrot.slane %v539_v24, %v544_v30 }
 0x13f   : > { %v547_v34 = vpack.c.bf16 %v545_v32, %v545_v32 }
 0x141   : > { %882 = vmatmul.mubr.bf16.vlgmr.msra.gmra.mrb[0].mxu0 %v547_v34 }
 0x214   : > { %v646_v36 = vpop.f32.mrb[0].mxu0 }
 0x215   : > { %v653_v37 = vadd.f32 %v652_v35, %v646_v36  ;;  %v883_v38 = vpop.f32.mrb[1].mxu0 }
 0x216   : > { %v649_v39 = vpop.f32.mrb[2].mxu0 }
 0x217   : > { %654 = vst [vmem:[%s276_s12] sm:$0x1] %v653_v37  ;;  %v884_v40 = vpop.f32.mrb[3].mxu0 }
 0x218 PF: > { %s822_s15 = sshll.u32 %s1100_s25, 4  ;;  %s672_s17 = sshll.u32 %s270_s11, 4  ;;  %s673_s17 = int_to_ptr.vmem [resolvable:$true] %s672_s17 }
 0x219   : > { %s1300_s8 = scalar_lea.hbm %s1382_s5, %s822_s15  ;;  %s656_s18 = scalar_lea.sflag [#allocation4], %s1224_s14 }
 0x21a   : > { %s986_s19 = scalar_lea.vmem %s673_s17, 16  ;;  %s1117_s20 = smov [#allocation3]  }
 0x21b   : > { %p987_p2 = scmp.ne.s32.totalorder %s673_s17, %s986_s19  ;;  %s990_s29 = sshll.u32 %s1117_s20, 4  ;;  %s991_s29 = int_to_ptr.vmem [resolvable:$false] %s990_s29 }
 0x21c   : > { %s992_s30 = scalar_lea.vmem %s991_s29, 32  ;;  %p993_p6 = scmp.lt.s32.totalorder %s673_s17, %s991_s29 }
 0x21d   : > { %p988_p4 = pnand %p987_p2, %p1203_p3  ;;  %p994_p7 = scmp.lt.s32.totalorder %s992_s30, %s986_s19 }
 0x21f   : > { %p989_p5 = pneg %p988_p4  ;;  %p995_p8 = por %p994_p7, %p993_p6 }
 0x221   : > { %p996_p10 = pnand %p995_p8, %p989_p5 }
 0x223   : > { %999 = shalt.err (!%p996_p10)
}
 0x224   : > { %s1000_s11 = scalar_lea.hbm %s1300_s8, 16  ;;  %s1004_s7 = scalar_lea.hbm %s1382_s5, 32 }
 0x225   : > { %p1001_p11 = scmp.ne.s32.totalorder %s1300_s8, %s1000_s11  ;;  %p1005_p0 = scmp.lt.u32.totalorder %s1300_s8, %s1382_s5 }
 0x226   : > { %p1006_p1 = scmp.lt.u32.totalorder %s1004_s7, %s1000_s11  ;;  %p1008_p4 = scmp.lt.u32.totalorder %s1000_s11, %s1300_s8 }
 0x227   : > { %p1002_p12 = pnand %p1001_p11, %p1203_p3 }
 0x228   : > { %p1007_p2 = por %p1006_p1, %p1005_p0 }
 0x229   : > { %p1003_p13 = pneg %p1002_p12 }
 0x22a   : > { %p1009_p5 = por %p1008_p4, %p1007_p2 }
 0x22c   : > { %p1010_p6 = pnand %p1009_p5, %p1003_p13 }
 0x22e   : > { %1013 = shalt.err (!%p1010_p6)
}
 0x22f   : > { %889 = dma.vmem_to_hbm [thread:$0]  (%p1203_p3), %s673_s17, 16, %s1300_s8, %s656_s18  }
 0x230   : > { %s1327_s24 = scalar_lea.hbm %s1383_s6, %s822_s15  ;;  %s685_s16 = sshll.u32 %s276_s12, 4  ;;  %s686_s16 = int_to_ptr.vmem [resolvable:$true] %s685_s16 }
 0x231   : > { %s660_s11 = scalar_lea.sflag [#allocation6], %s1224_s14  ;;  %s1014_s7 = scalar_lea.vmem %s686_s16, 16 }
 0x232   : > { %p1015_p7 = scmp.ne.s32.totalorder %s686_s16, %s1014_s7  ;;  %s1118_s20 = smov [#allocation5]  }
 0x233   : > { %s1018_s29 = sshll.u32 %s1118_s20, 4  ;;  %s1019_s29 = int_to_ptr.vmem [resolvable:$false] %s1018_s29 }
 0x234   : > { %p1016_p8 = pnand %p1015_p7, %p1203_p3  ;;  %s1020_s0 = scalar_lea.vmem %s1019_s29, 32 }
 0x235   : > { %p1021_p11 = scmp.lt.s32.totalorder %s686_s16, %s1019_s29  ;;  %p1022_p12 = scmp.lt.s32.totalorder %s1020_s0, %s1014_s7 }
 0x236   : > { %p1017_p10 = pneg %p1016_p8 }
 0x237   : > { %p1023_p13 = por %p1022_p12, %p1021_p11 }
 0x239   : > { %p1024_p0 = pnand %p1023_p13, %p1017_p10 }
 0x23b   : > { %1027 = shalt.err (!%p1024_p0)
}
 0x23c   : > { %s1028_s25 = scalar_lea.hbm %s1327_s24, 16  ;;  %s1032_s15 = scalar_lea.hbm %s1383_s6, 32 }
 0x23d   : > { %p1029_p1 = scmp.ne.s32.totalorder %s1327_s24, %s1028_s25  ;;  %p1033_p5 = scmp.lt.u32.totalorder %s1327_s24, %s1383_s6 }
 0x23e   : > { %p1034_p6 = scmp.lt.u32.totalorder %s1032_s15, %s1028_s25  ;;  %p1036_p8 = scmp.lt.u32.totalorder %s1028_s25, %s1327_s24 }
 0x23f   : > { %p1030_p2 = pnand %p1029_p1, %p1203_p3 }
 0x240   : > { %p1035_p7 = por %p1034_p6, %p1033_p5 }
 0x241   : > { %p1031_p4 = pneg %p1030_p2 }
 0x242   : > { %p1037_p10 = por %p1036_p8, %p1035_p7 }
 0x244   : > { %p1038_p11 = pnand %p1037_p10, %p1031_p4 }
 0x246   : > { %1041 = shalt.err (!%p1038_p11)
}
 0x247   : > { %890 = dma.vmem_to_hbm [thread:$0]  (%p1203_p3), %s686_s16, 16, %s1327_s24, %s660_s11  }
 0x248 PF: > { %p900_p12 = scmp.ge.s32.totalorder %s1112_s28, 2  ;;  %s697_s0 = sand.u32 1, %s1084_s21  }
 0x249   : > { %s698_s18 = scalar_lea.sflag [#allocation4], %s697_s0 }
 0x24a   : > { %p894_p13 = pnand %p900_p12, %p1213_p9 }
 0x24c   : > { %1075 = dma.done.wait (!%p894_p13), %s698_s18, 16  }
 0x24d   : > { %1077 = vsyncadd (!%p894_p13), %s698_s18, 4294967280  ;;  %s706_s19 = scalar_lea.sflag [#allocation6], %s697_s0 }
 0x24e   : > { %1079 = dma.done.wait (!%p894_p13), %s706_s19, 16  }
 0x24f   : > { %1081 = vsyncadd (!%p894_p13), %s706_s19, 4294967280  ;;  %s23_s28 = sadd.s32 1, %s1112_s28   ;;  %s1391_s9 = sld [smem:[#allocation9_spill]] }
 0x250   : > { %p20_p0 = scmp.ge.s32.totalorder %s23_s28, 6   ;;  %s1392_s30 = sld [smem:[#allocation10_spill]] }
 0x251   : > { %s1393_s21 = smov %s1088_s22  ;;  %s1394_s22 = smov %s1092_s23 }
 0x252   : > { %s1395_s23 = smov %s1221_s13  ;;  %s1396_s24 = smov %s1104_s26 }
 0x253   : > { %s1397_s25 = smov %s1108_s27  ;;  %22 = sbr.rel (!%p20_p0) target bundleno = 9 (0x9), region = 100 }
 0x255   : > { %s1398_s26 = smov %s1391_s9 }
 0x256   : > { %s1399_s27 = smov %s1392_s30 }
 0x25a   :  { %710 = vsyncpa [#allocation4], 1 }
 0x25b   :  { %712 = vsyncpa [#allocation4 + $0x1], 1 }
 0x25c   :  { %713 = vsyncpa [#allocation6], 1 }
 0x25d   :  { %715 = vsyncpa [#allocation6 + $0x1], 1 }

</bundles_post_ra>
